<compile_context>
chip_gen: v6e
topology: v6e:2x2x1
jax: 0.10.0
libtpu: 0.0.40
codegen_flags: <defaults>
</compile_context>

<pallas_src>
import jax
import jax.numpy as jnp
from jax.experimental import pallas as pl
from jax.experimental.pallas import tpu as pltpu

_TILE_BYTES = 1 << 20      # target ~1 MiB of x (per buffer) per grid step
_MAX_TILE_ROWS = 8192


def _pick_batch_tile(b: int, d: int) -> int:
    """Batch rows per grid step: big enough to amortize per-step overhead,
    small enough to keep >=2 parallel steps for v7x's two TensorCores and to
    stay well inside v5e's 16 MiB scoped VMEM when double-buffered."""
    if b < 8:
        return b                                   # tiny batch: one full block
    rows = (_TILE_BYTES // (4 * d)) // 8 * 8       # ~1 MiB of f32 rows
    tb = max(8, min(_MAX_TILE_ROWS, rows))
    if b >= 16:
        tb = min(tb, max(8, (b // 2) // 8 * 8))    # keep >=2 grid steps (v7x)
    return min(tb, (b // 8) * 8)                   # never exceed the array dim


def _perceptron_batch_kernel(w_ref, x_ref, score_ref, pred_ref):
    # Cast to f32 on the VPU (callers may pass bf16; no wrapper-side HBM copy).
    w = w_ref[...].astype(jnp.float32)             # (1, D)
    x = x_ref[...].astype(jnp.float32)             # (TB, D)
    # Per-row score: VPU broadcast-multiply + lane reduction (no MXU).
    s_col = jnp.sum(x * w, axis=-1, keepdims=True)           # (TB, 1) f32
    # Lane-dense output: XLU transpose of the score column -> unmasked stores.
    s_row = s_col.T.reshape(score_ref.shape)                  # (1, 1, TB)
    score_ref[...] = s_row
    # Fused prediction: +1 if score >= 0 else -1 (free VPU compare+select).
    pred_ref[...] = jnp.where(s_row >= 0.0, 1, -1).astype(jnp.int32)


@jax.jit
def perceptron_forward_batch(w, xs):
    """Scores and +1/-1 predictions for a whole (B, D) batch in ONE launch.

    w:  (1, D) weights, xs: (B, D) data points (f32 or bf16).
    Returns (scores: (B,) float32, preds: (B,) int32).
    """
    b, d = xs.shape
    tb = _pick_batch_tile(b, d)
    n_tiles = pl.cdiv(b, tb)

    scores, preds = pl.pallas_call(
        _perceptron_batch_kernel,
        out_shape=(
            jax.ShapeDtypeStruct((n_tiles, 1, tb), jnp.float32),
            jax.ShapeDtypeStruct((n_tiles, 1, tb), jnp.int32),
        ),
        grid=(n_tiles,),
        in_specs=[
            pl.BlockSpec((1, d), lambda i: (0, 0)),    # w stays resident
            pl.BlockSpec((tb, d), lambda i: (i, 0)),   # batch tile, real (unpadded) D
        ],
        out_specs=(
            pl.BlockSpec((1, 1, tb), lambda i: (i, 0, 0)),
            pl.BlockSpec((1, 1, tb), lambda i: (i, 0, 0)),
        ),
        compiler_params=pltpu.CompilerParams(
            # Batch axis is independent -> v7x can shard it across its 2 TCs.
            dimension_semantics=("parallel",),
        ),
    )(w, xs)

    # Rows >= b of a partial last block are masked garbage; never consume them.
    return scores.reshape(-1)[:b], preds.reshape(-1)[:b]


@jax.jit
def perceptron_forward(w, x):
    """Score for a single data point: tensordot(w, x) == sum(w * x).
    B=1 is dispatch-dominated, so a plain fused XLA op beats a kernel launch."""
    return jnp.sum(w.astype(jnp.float32) * x.astype(jnp.float32))


@jax.jit
def perceptron_get_prediction(w, x):
    """Predicted class for a single data point: +1 if score >= 0 else -1."""
    s = jnp.sum(w.astype(jnp.float32) * x.astype(jnp.float32))
    return jnp.where(s >= 0.0, 1, -1).astype(jnp.int32)


if __name__ == "__main__":
    dimensions = 32
    batch = 64

    # __init__: w = Parameter(ones((1, dimensions)))
    w = jnp.ones((1, dimensions), dtype=jnp.float32)

    key = jax.random.PRNGKey(0)
    k1, k2 = jax.random.split(key)
    xs = jax.random.normal(k1, (batch, dimensions), dtype=jnp.float32)
    x = xs[0:1]                                    # single data point, shape (1, D)

    # ---- Batched Pallas kernel (main path) ----
    scores, preds = jax.block_until_ready(perceptron_forward_batch(w, xs))
    ref_scores = xs @ w[0]
    ref_preds = jnp.where(ref_scores >= 0, 1, -1).astype(jnp.int32)
    assert scores.shape == (batch,) and preds.shape == (batch,)
    assert jnp.allclose(scores, ref_scores, atol=1e-5, rtol=1e-5)
    assert jnp.array_equal(preds, ref_preds)

    # ---- Ragged batch: exercises the partial last block + tail masking ----
    xr = jax.random.normal(k2, (13, dimensions), dtype=jnp.float32)
    scores_r, preds_r = jax.block_until_ready(perceptron_forward_batch(w, xr))
    ref_r = xr @ w[0]
    assert jnp.allclose(scores_r, ref_r, atol=1e-5, rtol=1e-5)
    assert jnp.array_equal(preds_r, jnp.where(ref_r >= 0, 1, -1).astype(jnp.int32))

    # ---- bf16 inputs: cast happens inside the kernel (no HBM upcast copy) ----
    scores_bf, _ = jax.block_until_ready(
        perceptron_forward_batch(w.astype(jnp.bfloat16), xs.astype(jnp.bfloat16)))
    ref_bf = xs.astype(jnp.bfloat16).astype(jnp.float32) @ w[0]
    assert jnp.allclose(scores_bf, ref_bf, atol=1e-2, rtol=1e-2)

    # ---- Single data point: forward() == tensordot(w, x); get_prediction ----
    score = jax.block_until_ready(perceptron_forward(w, x))
    pred = jax.block_until_ready(perceptron_get_prediction(w, x))
    ref_score = jnp.sum(w * x)
    assert jnp.allclose(score, ref_score, atol=1e-5, rtol=1e-5)
    assert int(pred) == (1 if float(ref_score) >= 0 else -1)

    # Single sample also works through the batched kernel (B=1 path).
    s1, p1 = jax.block_until_ready(perceptron_forward_batch(w, x))
    assert jnp.allclose(s1[0], ref_score, atol=1e-5, rtol=1e-5)
    assert int(p1[0]) == int(pred)

    print("KERNEL_OK")
</pallas_src>

<mosaic_0001>
module attributes {stable_mosaic.version = 11 : i64} {
  func.func @_perceptron_batch_kernel(%arg0: i32, %arg1: memref<1x32xf32, #tpu.memory_space<vmem>>, %arg2: memref<32x32xf32, #tpu.memory_space<vmem>>, %arg3: memref<1x1x32xf32, #tpu.memory_space<vmem>>, %arg4: memref<1x1x32xi32, #tpu.memory_space<vmem>>) attributes {dimension_semantics = [#tpu.dimension_semantics<parallel>], iteration_bounds = array<i64: 2>, scalar_prefetch = 0 : i64, scratch_operands = 0 : i64, tpu.core_type = #tpu.core_type<tc>, window_params = [{pipeline_mode = #tpu.pipeline_mode<synchronous>, transform_indices = @transform_0, window_bounds = array<i64: 1, 32>}, {transform_indices = @transform_1, window_bounds = array<i64: 32, 32>}, {transform_indices = @transform_2, window_bounds = array<i64: 1, 1, 32>}, {transform_indices = @transform_3, window_bounds = array<i64: 1, 1, 32>}]} {
    %c0 = arith.constant 0 : index
    %c0_0 = arith.constant 0 : index
    %0 = vector.load %arg1[%c0, %c0_0] : memref<1x32xf32, #tpu.memory_space<vmem>>, vector<1x32xf32>
    %c0_1 = arith.constant 0 : index
    %c0_2 = arith.constant 0 : index
    %1 = vector.load %arg2[%c0_1, %c0_2] : memref<32x32xf32, #tpu.memory_space<vmem>>, vector<32x32xf32>
    %2 = vector.broadcast %0 : vector<1x32xf32> to vector<32x32xf32>
    %3 = arith.mulf %1, %2 : vector<32x32xf32>
    %cst = arith.constant dense<0.000000e+00> : vector<32xf32>
    %4 = vector.multi_reduction <add>, %3, %cst [1] : vector<32x32xf32> to vector<32xf32>
    %5 = vector.shape_cast %4 : vector<32xf32> to vector<32x1xf32>
    %6 = tpu.transpose %5, [1, 0] : vector<32x1xf32> -> vector<1x32xf32>
    %7 = vector.shape_cast %6 : vector<1x32xf32> to vector<1x1x32xf32>
    %c0_3 = arith.constant 0 : index
    %c0_4 = arith.constant 0 : index
    %c0_5 = arith.constant 0 : index
    %8 = vector.load %arg3[%c0_3, %c0_4, %c0_5] : memref<1x1x32xf32, #tpu.memory_space<vmem>>, vector<1x1x32xf32>
    tpu.vector_store %arg3[%c0_3, %c0_4, %c0_5], %7 {strides = array<i32>} : memref<1x1x32xf32, #tpu.memory_space<vmem>>, vector<1x1x32xf32>,
    %cst_6 = arith.constant 0.000000e+00 : f32
    %9 = vector.broadcast %cst_6 : f32 to vector<1x1x32xf32>
    %10 = arith.cmpf oge, %7, %9 : vector<1x1x32xf32>
    %c1_i32 = arith.constant 1 : i32
    %c-1_i32 = arith.constant -1 : i32
    %11 = vector.broadcast %c1_i32 : i32 to vector<1x1x32xi32>
    %12 = vector.broadcast %c-1_i32 : i32 to vector<1x1x32xi32>
    %13 = arith.select %10, %11, %12 : vector<1x1x32xi1>, vector<1x1x32xi32>
    %c0_7 = arith.constant 0 : index
    %c0_8 = arith.constant 0 : index
    %c0_9 = arith.constant 0 : index
    %14 = vector.load %arg4[%c0_7, %c0_8, %c0_9] : memref<1x1x32xi32, #tpu.memory_space<vmem>>, vector<1x1x32xi32>
    tpu.vector_store %arg4[%c0_7, %c0_8, %c0_9], %13 {strides = array<i32>} : memref<1x1x32xi32, #tpu.memory_space<vmem>>, vector<1x1x32xi32>,
    return
  }
  func.func @transform_0(%arg0: i32) -> (i32, i32) {
    %c0_i32 = arith.constant 0 : i32
    %c0_i32_0 = arith.constant 0 : i32
    %c0_i32_1 = arith.constant 0 : i32
    return %c0_i32, %c0_i32_0 : i32, i32
  }
  func.func @transform_1(%arg0: i32) -> (i32, i32) {
    %c0_i32 = arith.constant 0 : i32
    %c0_i32_0 = arith.constant 0 : i32
    return %arg0, %c0_i32 : i32, i32
  }
  func.func @transform_2(%arg0: i32) -> (i32, i32, i32) {
    %c0_i32 = arith.constant 0 : i32
    %c0_i32_0 = arith.constant 0 : i32
    %c0_i32_1 = arith.constant 0 : i32
    return %arg0, %c0_i32, %c0_i32_0 : i32, i32, i32
  }
  func.func @transform_3(%arg0: i32) -> (i32, i32, i32) {
    %c0_i32 = arith.constant 0 : i32
    %c0_i32_0 = arith.constant 0 : i32
    %c0_i32_1 = arith.constant 0 : i32
    return %arg0, %c0_i32, %c0_i32_0 : i32, i32, i32
  }
}

</mosaic_0001>

<bundles_post_ra>
// kernel: perceptron_forward_batch.1
= control target key start
LH: loop header
LB: loop body
LE: loop exit
PB: predicated region body
PF: predicated region fallthrough
CT: control target
= control target key end

     0   :  { %s364_s12 = smov 0   ;;  %s392_s0 = inlined_call_operand.vmem [shape: f32[1,32], index: 0, kind: input, shape index: {}]   ;;  %s393_s1 = inlined_call_operand.vmem [shape: f32[64,32], index: 1, kind: input, shape index: {}]   ;;  %s394_s2 = inlined_call_operand.vmem [shape: f32[2,1,32], index: 2, kind: output, shape index: {0}]   ;;  %s395_s3 = inlined_call_operand.vmem [shape: s32[2,1,32], index: 3, kind: output, shape index: {1}]  }
   0x1 LB: > { %s370_s13 = sadd.s32 4294967295, %s341_s12   ;;  %p319_p0 = scmp.ge.s32.totalorder %s341_s12, 1  ;;  %s341_s12 = sphi %s364_s12, %s14_s12  }
   0x2   : > { %p141_p1 = scmp.lt.s32.totalorder %s341_s12, 3 }
   0x4   : > { %p142_p2 = pnand %p319_p0, %p141_p1 }
   0x5   : > { %s320_s14 = sshll.u32 (!%p142_p2), %s370_s13, 2  ;;  %p172_p4 = scmp.lt.s32.totalorder (!%p142_p2), %s370_s13, 1 }
   0x6   : > { %145 = sbr.rel (%p142_p2) target bundleno = 284 (0x11c), region = 28  ;;  %p167_p3 = scmp.lt.s32.totalorder (!%p142_p2), %s320_s14, 7 }
   0xb   : > { %s397_s14 = smov (!%p167_p3, %s320_s14), 7  ;;  %v322_v0 = vld [vmem:[%s392_s0] ss:$0 sm:$0xff]  ;;  %vm193_vm0 = vcmask 261120   ;;  %s399_s13 = smov (!%p172_p4, %s370_s13), 1  ;;  %vm238_vm1 = vcmask 253952  }
   0xc   : > { %s321_s15 = sshll.u32 %s397_s14, 3  ;;  %s174_s23 = scalar_lea.vmem %s394_s2, %s399_s13  ;;  %v343_v18 = vmov 4294967295  }
   0xd   : > { %s170_s20 = scalar_lea.vmem %s393_s1, %s321_s15  ;;  %s177_s26 = scalar_lea.vmem %s395_s3, %s399_s13 }
   0xe   : > { %v179_v1 = vld [vmem:[%s170_s20] sm:$0xff]  ;;  %v180_v2 = vld [vmem:[%s170_s20 + $0x8] sm:$0xff]  ;;  %v181_v3 = vld [vmem:[%s170_s20 + $0x10] sm:$0xff] }
   0xf   : > { %v189_v4 = vmul.f32 %v322_v0, %v179_v1  ;;  %v190_v5 = vmul.f32 %v322_v0, %v180_v2  ;;  %v191_v6 = vmul.f32 %v322_v0, %v181_v3  ;;  %v182_v7 = vld [vmem:[%s170_s20 + $0x18] sm:$0xff] }
  0x10   : > { %v192_v8 = vmul.f32 %v322_v0, %v182_v7 }
  0x11   : > { %v194_v9 = vsel %vm193_vm0, %v189_v4, 0.0  ;;  %v200_v10 = vsel %vm193_vm0, %v191_v6, 0.0  ;;  %v197_v11 = vsel %vm193_vm0, %v190_v5, 0.0 }
  0x12   : > { %195 = vadd.xlane.f32.xlu0 %v194_v9  ;;  %201 = vadd.xlane.f32.xlu1 %v200_v10  ;;  %v203_v12 = vsel %vm193_vm0, %v192_v8, 0.0 }
  0x16   : > { %198 = vadd.xlane.f32.xlu0 %v197_v11  ;;  %204 = vadd.xlane.f32.xlu1 %v203_v12 }
  0x9b   : > { %v196_v13 = vpop.xlane.xlu0 %195  ;;  %v202_v15 = vpop.xlane.xlu1 %201 }
  0x9c   : > { %206 = vxpose.xlu0.b32.start [1/4] (short) (narrow) %v196_v13, 8 }
  0x9f   : > { %v199_v14 = vpop.xlane.xlu0 %198  ;;  %v205_v16 = vpop.xlane.xlu1 %204 }
  0xa0   : > { %207 = vxpose.xlu0.b32.cont [2/4] (short) (narrow) %v199_v14, 8 }
  0xa4   : > { %208 = vxpose.xlu0.b32.cont [3/4] (short) (narrow) %v202_v15, 8 }
  0xa8   : > { %209 = vxpose.xlu0.b32.end [4/4] (short) (narrow) %v205_v16, 8 }
 0x118   : > { %v222_v17 = vpop.trf.xlu0 }
 0x119   : > { %239 = vst.msk [vmem:[%s174_s23] sm:$0x1] %vm238_vm1, %v222_v17  ;;  %vm240_vm2 = vcmp.ge.f32.partialorder %v222_v17, 0.0 }
 0x11a   : > { %v241_v19 = vsel %vm240_vm2, 1, %v343_v18 }
 0x11b   : > { %242 = vst.msk [vmem:[%s177_s26] sm:$0x1] %vm238_vm1, %v241_v19 }
 0x11c PF: > { %s14_s12 = sadd.s32 1, %s341_s12  }
 0x11d   : > { %p11_p5 = scmp.ge.s32.totalorder %s14_s12, 4  }
 0x11f   :  { %13 = sbr.rel (!%p11_p5) target bundleno = 1 (0x1), region = 70 }

</bundles_post_ra>
